<compile_context>
chip_gen: v5e
topology: v5e:2x2
jax: 0.10.0
libtpu: 0.0.40
codegen_flags: <defaults>
</compile_context>

<pallas_src>
import functools

import jax
import jax.numpy as jnp
import numpy as np
from jax import lax
from jax.experimental import pallas as pl
from jax.experimental.pallas import tpu as pltpu

LANE = 128


def _round_up(n, m):
    return ((n + m - 1) // m) * m


# -----------------------------------------------------------------------------
# Kernel: one 2-D row block of (batch*seq) rows, feature dims padded to 128.
# -----------------------------------------------------------------------------
def _mamba_block_kernel(
    x_ref,        # (R, Dp)     f32 activation rows (batch*seq folded, D zero-padded)
    gamma_ref,    # (1, Dp)     layernorm weight (padded with zeros)
    beta_ref,     # (1, Dp)     layernorm bias   (padded with zeros)
    w_in_ref,     # (Dp, 2*DIp) in_proj weight [w_in1 | w_in2], pre-transposed, bf16
    conv_w_ref,   # (3, DIp)    depthwise conv taps [t-1, t, t+1], f32
    w_dt_ref,     # (DIp, DIp)  dt_proj weight, pre-transposed, bf16
    b_dt_ref,     # (1, DIp)    dt_proj bias, f32
    w_out_ref,    # (DIp, Dp)   out_proj weight, pre-transposed, bf16
    scale_ref,    # (1, Dp)     layer_scale (padded with zeros)
    out_ref,      # (R, Dp)
    *, L, d_model, d_inner_p,
):
    R, Dp = x_ref.shape
    DIp = d_inner_p

    x = x_ref[...].astype(jnp.float32)                       # residual (R, Dp)

    # ---- LayerNorm over the true d_model columns (padded input lanes are 0) --
    inv_d = 1.0 / float(d_model)
    mean = jnp.sum(x, axis=-1, keepdims=True) * inv_d
    xc = x - mean
    if d_model != Dp:
        valid = (lax.broadcasted_iota(jnp.int32, (1, Dp), 1) < d_model
                 ).astype(jnp.float32)
        xc = xc * valid                   # re-zero padded lanes after mean sub
    var = jnp.sum(xc * xc, axis=-1, keepdims=True) * inv_d
    xn = xc * lax.rsqrt(var + 1e-5) * gamma_ref[...] + beta_ref[...]

    # ---- in_proj: one wide bf16 MXU matmul, f32 accumulation ----------------
    x12 = jnp.dot(xn.astype(jnp.bfloat16), w_in_ref[...],
                  preferred_element_type=jnp.float32)         # (R, 2*DIp)
    x1 = x12[:, :DIp]
    sig_x2 = jax.nn.sigmoid(x12[:, DIp:])   # reduce x2 immediately; x12 dies

    # ---- depthwise conv1d along L (k=3, pad=1, groups=d_inner) --------------
    # Batch is folded along rows; zero the rows where the roll would wrap
    # across a sequence boundary (row blocks are multiples of L, so block
    # boundaries are sequence boundaries too).
    row = lax.broadcasted_iota(jnp.int32, (R, 1), 0)
    if (L & (L - 1)) == 0:                                   # power-of-two fast path
        l_pos = jnp.bitwise_and(row, L - 1)
    else:
        l_pos = lax.rem(row, jnp.int32(L))
    mask_prev = (l_pos != 0).astype(jnp.float32)             # (R, 1)
    mask_next = (l_pos != L - 1).astype(jnp.float32)         # (R, 1)

    x_prev = pltpu.roll(x1, shift=1, axis=0) * mask_prev
    x_next = pltpu.roll(x1, shift=R - 1, axis=0) * mask_next
    x1_conv = (x_prev * conv_w_ref[0:1, :]
               + x1 * conv_w_ref[1:2, :]
               + x_next * conv_w_ref[2:3, :])

    # ---- SiLU (f32 on the VPU/EUP) -------------------------------------------
    x1_ssm = x1_conv * jax.nn.sigmoid(x1_conv)

    # ---- dt_proj -> fused sigmoid(softplus(z)) = 1 - 1/(2 + exp(z)) ----------
    # Overflow-safe: exp(z)->inf gives 1 - 0 = 1; exp(z)->0 gives 0.5.
    dt_pre = jnp.dot(x1_ssm.astype(jnp.bfloat16), w_dt_ref[...],
                     preferred_element_type=jnp.float32) + b_dt_ref[...]
    sig_sp = 1.0 - pl.reciprocal(2.0 + jnp.exp(dt_pre), approx=True)
    x1_processed = x1_ssm * sig_sp

    # ---- gate, out_proj, layer_scale, (dropout = identity), residual ---------
    x_gated = x1_processed * sig_x2
    out = jnp.dot(x_gated.astype(jnp.bfloat16), w_out_ref[...],
                  preferred_element_type=jnp.float32)
    out_ref[...] = (out * scale_ref[...] + x).astype(out_ref.dtype)


# -----------------------------------------------------------------------------
# Block-size selection: Bt batches per block (rows = Bt*L), prefer >=2 grid
# steps (v7x has 2 TCs), rows a multiple of 8 (sublane tiling), fit in VMEM.
# -----------------------------------------------------------------------------
def _pick_bt(B, L, max_rows):
    divs = [d for d in range(1, B + 1) if B % d == 0]
    ok = [d for d in divs if (d * L) % 8 == 0 or d == B]
    pref = [d for d in ok if d * L <= max_rows and B // d >= 2]
    if pref:
        return max(pref)
    pref = [d for d in ok if d * L <= max_rows]
    if pref:
        return max(pref)
    return min(ok)


def _vmem_budget_bytes():
    # ~75% of physical VMEM: ~48 MiB on v7x, ~96 MiB on v5e/v6e.
    try:
        cap = int(getattr(pltpu.get_tpu_info(), "vmem_capacity_bytes",
                          64 * 2**20))
    except Exception:
        cap = 64 * 2**20
    return int(0.75 * cap)


# -----------------------------------------------------------------------------
# Wrapper
# -----------------------------------------------------------------------------
@jax.jit
def unified_mamba_block(x, packed):
    """x: (B, L, D) float32. packed: padded / transposed / bf16 weight dict."""
    B, L, D = x.shape
    Dp = packed["gamma"].shape[1]
    DIp = packed["w_in"].shape[1] // 2
    N = B * L

    # Host-side flatten (free); zero-pad the feature dim only when needed.
    x2d = x.reshape(N, D)
    if Dp != D:
        x2d = jnp.pad(x2d, ((0, 0), (0, Dp - D)))
    # TODO(synk): when stacking blocks, keep activations Dp-padded between
    # layers to drop this pad and the final slice entirely.

    weights = (packed["gamma"], packed["beta"], packed["w_in"],
               packed["conv_w"], packed["w_dt"], packed["b_dt"],
               packed["w_out"], packed["scale"])
    weight_bytes = sum(int(np.prod(w.shape)) * w.dtype.itemsize
                       for w in weights)

    budget = _vmem_budget_bytes()

    # Per-row VMEM: double-buffered f32 in/out blocks + bf16 layernorm output
    # + ~10 live f32 (rows, DIp) temporaries.
    bytes_per_row = 4 * Dp * 4 + 2 * Dp + 10 * DIp * 4
    max_rows = max(L, (budget - 2 * weight_bytes) // bytes_per_row)
    Bt = _pick_bt(B, L, min(2048, int(max_rows)))
    R = Bt * L
    grid = (B // Bt,)

    need = R * bytes_per_row + 2 * weight_bytes
    vmem_limit = int(min(budget, max(2 * need, 16 * 2**20)))

    flops = 2 * N * (Dp * 2 * DIp + DIp * DIp + DIp * Dp)
    cost = pl.CostEstimate(
        flops=int(flops),
        transcendentals=int(N * 4 * DIp),
        bytes_accessed=int(2 * N * Dp * 4 + weight_bytes),
    )

    # Weights: constant index_map + single pipeline buffer (VMEM-resident).
    def _wspec(a):
        return pl.BlockSpec(a.shape, lambda b: (0,) * a.ndim,
                            pipeline_mode=pl.Buffered(1))

    kernel = functools.partial(_mamba_block_kernel,
                               L=L, d_model=D, d_inner_p=DIp)

    out2d = pl.pallas_call(
        kernel,
        out_shape=jax.ShapeDtypeStruct((N, Dp), x.dtype),
        grid_spec=pltpu.PrefetchScalarGridSpec(
            num_scalar_prefetch=0,
            grid=grid,
            in_specs=[pl.BlockSpec((R, Dp), lambda b: (b, 0))]
                     + [_wspec(w) for w in weights],
            out_specs=pl.BlockSpec((R, Dp), lambda b: (b, 0)),
        ),
        compiler_params=pltpu.CompilerParams(
            dimension_semantics=("parallel",),
            vmem_limit_bytes=vmem_limit),
        cost_estimate=cost,
    )(x2d, *weights)

    out = out2d.reshape(B, L, Dp)
    if Dp != D:
        out = out[..., :D]
    return out


# -----------------------------------------------------------------------------
# Host-side parameter packing: transpose to (in, out), pad to 128 lanes, bf16
# -----------------------------------------------------------------------------
def pack_params(p, d_model, d_inner):
    Dp = _round_up(d_model, LANE)
    DIp = _round_up(d_inner, LANE)
    f32, bf16 = jnp.float32, jnp.bfloat16

    def pad_row(v, n):                       # (k,) -> (1, n)
        return jnp.pad(v, (0, n - v.shape[0])).reshape(1, n).astype(f32)

    def pad_mat(m, r, c):
        return jnp.pad(m, ((0, r - m.shape[0]), (0, c - m.shape[1])))

    w_in = p["w_in"]                                         # (2*di, D)
    w_in1 = pad_mat(w_in[:d_inner].T, Dp, DIp)               # (Dp, DIp)
    w_in2 = pad_mat(w_in[d_inner:].T, Dp, DIp)               # (Dp, DIp)
    return {
        "gamma": pad_row(p["gamma"], Dp),
        "beta": pad_row(p["beta"], Dp),
        "w_in": jnp.concatenate([w_in1, w_in2], axis=1).astype(bf16),
        "conv_w": pad_mat(p["conv_w"][:, 0, :].T, 3, DIp).astype(f32),
        "w_dt": pad_mat(p["w_dt"].T, DIp, DIp).astype(bf16),
        "b_dt": pad_row(p["b_dt"], DIp),
        "w_out": pad_mat(p["w_out"].T, DIp, Dp).astype(bf16),
        "scale": pad_row(p["scale"], Dp),
    }


# -----------------------------------------------------------------------------
# Pure-JAX reference (mirrors the PyTorch forward exactly, f32 throughout)
# -----------------------------------------------------------------------------
def reference_forward(x, p):
    d_inner = p["w_dt"].shape[0]
    mean = x.mean(-1, keepdims=True)
    var = ((x - mean) ** 2).mean(-1, keepdims=True)
    xn = (x - mean) / jnp.sqrt(var + 1e-5) * p["gamma"] + p["beta"]
    xp = xn @ p["w_in"].T
    x1, x2 = xp[..., :d_inner], xp[..., d_inner:]
    cw = p["conv_w"][:, 0, :]                                # (di, 3)
    x1p = jnp.pad(x1, ((0, 0), (1, 1), (0, 0)))
    x1_conv = (x1p[:, :-2] * cw[:, 0] + x1p[:, 1:-1] * cw[:, 1]
               + x1p[:, 2:] * cw[:, 2])
    x1_ssm = x1_conv * jax.nn.sigmoid(x1_conv)
    dt = jax.nn.softplus(x1_ssm @ p["w_dt"].T + p["b_dt"])
    x1_processed = x1_ssm * jax.nn.sigmoid(dt)
    x_gated = x1_processed * jax.nn.sigmoid(x2)
    out = (x_gated @ p["w_out"].T) * p["scale"]
    return out + x


# -----------------------------------------------------------------------------
# Deterministic parameter construction (matching module __init__ shapes)
# -----------------------------------------------------------------------------
def make_params(key, d_model, expand_factor=1.5):
    d_inner = int(d_model * expand_factor)
    ks = jax.random.split(key, 6)
    f32 = jnp.float32
    # torch shapes: in_proj (2*d_inner, d_model); conv1d (d_inner, 1, 3);
    # dt_proj (d_inner, d_inner) + bias; out_proj (d_model, d_inner).
    return {
        "gamma": jnp.ones((d_model,), f32),
        "beta": jnp.zeros((d_model,), f32),
        "w_in": jax.random.normal(ks[0], (2 * d_inner, d_model), f32) * 0.02,
        "conv_w": jax.random.normal(ks[1], (d_inner, 1, 3), f32) * 0.1,
        "w_dt": jax.random.normal(ks[2], (d_inner, d_inner), f32) * 0.02,
        "b_dt": jax.random.normal(ks[3], (d_inner,), f32) * 0.02,
        "w_out": jax.random.normal(ks[4], (d_model, d_inner), f32) * 0.02,
        "scale": jnp.full((d_model,), 0.1, f32),
    }


# -----------------------------------------------------------------------------
if __name__ == "__main__":
    B, L, d_model = 2, 8, 32              # d_inner = int(32 * 1.5) = 48
    expand = 1.5
    d_inner = int(d_model * expand)

    key = jax.random.PRNGKey(0)
    k_x, k_p = jax.random.split(key)

    x = jax.random.normal(k_x, (B, L, d_model), jnp.float32)
    raw = make_params(k_p, d_model, expand)
    packed = pack_params(raw, d_model, d_inner)

    out = jax.block_until_ready(unified_mamba_block(x, packed))

    ref = reference_forward(x, raw)
    # bf16 matmul operands + approx reciprocal vs f32 reference -> loosened tol.
    np.testing.assert_allclose(np.asarray(out), np.asarray(ref),
                               rtol=2e-2, atol=2e-2)
    print("KERNEL_OK")
</pallas_src>

<mosaic_0001>
module attributes {stable_mosaic.version = 11 : i64} {
  func.func @_mamba_block_kernel(%arg0: i32, %arg1: memref<8x128xf32, #tpu.memory_space<vmem>>, %arg2: memref<1x128xf32, #tpu.memory_space<vmem>>, %arg3: memref<1x128xf32, #tpu.memory_space<vmem>>, %arg4: memref<128x256xbf16, #tpu.memory_space<vmem>>, %arg5: memref<3x128xf32, #tpu.memory_space<vmem>>, %arg6: memref<128x128xbf16, #tpu.memory_space<vmem>>, %arg7: memref<1x128xf32, #tpu.memory_space<vmem>>, %arg8: memref<128x128xbf16, #tpu.memory_space<vmem>>, %arg9: memref<1x128xf32, #tpu.memory_space<vmem>>, %arg10: memref<8x128xf32, #tpu.memory_space<vmem>>) attributes {dimension_semantics = [#tpu.dimension_semantics<parallel>], iteration_bounds = array<i64: 2>, scalar_prefetch = 0 : i64, scratch_operands = 0 : i64, tpu.core_type = #tpu.core_type<tc>, window_params = [{transform_indices = @transform_0, window_bounds = array<i64: 8, 128>}, {pipeline_mode = #tpu.pipeline_mode<synchronous>, transform_indices = @transform_1, window_bounds = array<i64: 1, 128>}, {pipeline_mode = #tpu.pipeline_mode<synchronous>, transform_indices = @transform_2, window_bounds = array<i64: 1, 128>}, {pipeline_mode = #tpu.pipeline_mode<synchronous>, transform_indices = @transform_3, window_bounds = array<i64: 128, 256>}, {pipeline_mode = #tpu.pipeline_mode<synchronous>, transform_indices = @transform_4, window_bounds = array<i64: 3, 128>}, {pipeline_mode = #tpu.pipeline_mode<synchronous>, transform_indices = @transform_5, window_bounds = array<i64: 128, 128>}, {pipeline_mode = #tpu.pipeline_mode<synchronous>, transform_indices = @transform_6, window_bounds = array<i64: 1, 128>}, {pipeline_mode = #tpu.pipeline_mode<synchronous>, transform_indices = @transform_7, window_bounds = array<i64: 128, 128>}, {pipeline_mode = #tpu.pipeline_mode<synchronous>, transform_indices = @transform_8, window_bounds = array<i64: 1, 128>}, {transform_indices = @transform_9, window_bounds = array<i64: 8, 128>}]} {
    %c0 = arith.constant 0 : index
    %c0_0 = arith.constant 0 : index
    %0 = vector.load %arg1[%c0, %c0_0] : memref<8x128xf32, #tpu.memory_space<vmem>>, vector<8x128xf32>
    %cst = arith.constant dense<0.000000e+00> : vector<8xf32>
    %1 = vector.multi_reduction <add>, %0, %cst [1] : vector<8x128xf32> to vector<8xf32>
    %2 = vector.shape_cast %1 : vector<8xf32> to vector<8x1xf32>
    %cst_1 = arith.constant 3.125000e-02 : f32
    %3 = vector.broadcast %cst_1 : f32 to vector<8x1xf32>
    %4 = arith.mulf %2, %3 : vector<8x1xf32>
    %5 = vector.broadcast %4 : vector<8x1xf32> to vector<8x128xf32>
    %6 = arith.subf %0, %5 : vector<8x128xf32>
    %7 = tpu.iota {dimensions = array<i32: 1>} : vector<1x128xi32>
    %c32_i32 = arith.constant 32 : i32
    %8 = vector.broadcast %c32_i32 : i32 to vector<1x128xi32>
    %9 = arith.cmpi slt, %7, %8 : vector<1x128xi32>
    %10 = arith.extui %9 : vector<1x128xi1> to vector<1x128xi32>
    %11 = arith.sitofp %10 : vector<1x128xi32> to vector<1x128xf32>
    %12 = vector.broadcast %11 : vector<1x128xf32> to vector<8x128xf32>
    %13 = arith.mulf %6, %12 : vector<8x128xf32>
    %14 = arith.mulf %13, %13 : vector<8x128xf32>
    %cst_2 = arith.constant dense<0.000000e+00> : vector<8xf32>
    %15 = vector.multi_reduction <add>, %14, %cst_2 [1] : vector<8x128xf32> to vector<8xf32>
    %16 = vector.shape_cast %15 : vector<8xf32> to vector<8x1xf32>
    %cst_3 = arith.constant 3.125000e-02 : f32
    %17 = vector.broadcast %cst_3 : f32 to vector<8x1xf32>
    %18 = arith.mulf %16, %17 : vector<8x1xf32>
    %cst_4 = arith.constant 9.99999974E-6 : f32
    %19 = vector.broadcast %cst_4 : f32 to vector<8x1xf32>
    %20 = arith.addf %18, %19 : vector<8x1xf32>
    %21 = math.rsqrt %20 : vector<8x1xf32>
    %22 = vector.broadcast %21 : vector<8x1xf32> to vector<8x128xf32>
    %23 = arith.mulf %13, %22 : vector<8x128xf32>
    %c0_5 = arith.constant 0 : index
    %c0_6 = arith.constant 0 : index
    %24 = vector.load %arg2[%c0_5, %c0_6] : memref<1x128xf32, #tpu.memory_space<vmem>>, vector<1x128xf32>
    %25 = vector.broadcast %24 : vector<1x128xf32> to vector<8x128xf32>
    %26 = arith.mulf %23, %25 : vector<8x128xf32>
    %c0_7 = arith.constant 0 : index
    %c0_8 = arith.constant 0 : index
    %27 = vector.load %arg3[%c0_7, %c0_8] : memref<1x128xf32, #tpu.memory_space<vmem>>, vector<1x128xf32>
    %28 = vector.broadcast %27 : vector<1x128xf32> to vector<8x128xf32>
    %29 = arith.addf %26, %28 : vector<8x128xf32>
    %30 = arith.truncf %29 : vector<8x128xf32> to vector<8x128xbf16>
    %c0_9 = arith.constant 0 : index
    %c0_10 = arith.constant 0 : index
    %31 = vector.load %arg4[%c0_9, %c0_10] : memref<128x256xbf16, #tpu.memory_space<vmem>>, vector<128x256xbf16>
    %cst_11 = arith.constant dense<0.000000e+00> : vector<8x256xf32>
    %32 = tpu.matmul %30, %31, %cst_11 {dimension_numbers = #tpu.dot_dimension_numbers<[1], [0], [0], [1], [0, 0, 1, 1], [], []>} : vector<8x128xbf16>, vector<128x256xbf16>, vector<8x256xf32> -> vector<8x256xf32>
    %33 = vector.extract_strided_slice %32 {offsets = [0, 0], sizes = [8, 128], strides = [1, 1]} : vector<8x256xf32> to vector<8x128xf32>
    %34 = vector.extract_strided_slice %32 {offsets = [0, 128], sizes = [8, 128], strides = [1, 1]} : vector<8x256xf32> to vector<8x128xf32>
    %35 = arith.negf %34 : vector<8x128xf32>
    %36 = math.exp %35 : vector<8x128xf32>
    %cst_12 = arith.constant 1.000000e+00 : f32
    %37 = vector.broadcast %cst_12 : f32 to vector<8x128xf32>
    %38 = arith.addf %37, %36 : vector<8x128xf32>
    %39 = arith.divf %37, %38 : vector<8x128xf32>
    %40 = tpu.iota {dimensions = array<i32: 0>} : vector<8x1xi32>
    %c7_i32 = arith.constant 7 : i32
    %41 = vector.broadcast %c7_i32 : i32 to vector<8x1xi32>
    %42 = arith.andi %40, %41 : vector<8x1xi32>
    %c0_i32 = arith.constant 0 : i32
    %43 = vector.broadcast %c0_i32 : i32 to vector<8x1xi32>
    %44 = arith.cmpi ne, %42, %43 : vector<8x1xi32>
    %45 = arith.extui %44 : vector<8x1xi1> to vector<8x1xi32>
    %46 = arith.sitofp %45 : vector<8x1xi32> to vector<8x1xf32>
    %c7_i32_13 = arith.constant 7 : i32
    %47 = vector.broadcast %c7_i32_13 : i32 to vector<8x1xi32>
    %48 = arith.cmpi ne, %42, %47 : vector<8x1xi32>
    %49 = arith.extui %48 : vector<8x1xi1> to vector<8x1xi32>
    %50 = arith.sitofp %49 : vector<8x1xi32> to vector<8x1xf32>
    %c1_i32 = arith.constant 1 : i32
    %51 = tpu.dynamic_rotate %33 by %c1_i32 dim 0 : vector<8x128xf32>, i32 -> vector<8x128xf32>
    %52 = vector.broadcast %46 : vector<8x1xf32> to vector<8x128xf32>
    %53 = arith.mulf %51, %52 : vector<8x128xf32>
    %c7_i32_14 = arith.constant 7 : i32
    %54 = tpu.dynamic_rotate %33 by %c7_i32_14 dim 0 : vector<8x128xf32>, i32 -> vector<8x128xf32>
    %55 = vector.broadcast %50 : vector<8x1xf32> to vector<8x128xf32>
    %56 = arith.mulf %54, %55 : vector<8x128xf32>
    %c0_15 = arith.constant 0 : index
    %c0_16 = arith.constant 0 : index
    %57 = vector.load %arg5[%c0_15, %c0_16] : memref<3x128xf32, #tpu.memory_space<vmem>>, vector<1x128xf32>
    %58 = vector.broadcast %57 : vector<1x128xf32> to vector<8x128xf32>
    %59 = arith.mulf %53, %58 : vector<8x128xf32>
    %c1 = arith.constant 1 : index
    %c0_17 = arith.constant 0 : index
    %60 = vector.load %arg5[%c1, %c0_17] : memref<3x128xf32, #tpu.memory_space<vmem>>, vector<1x128xf32>
    %61 = vector.broadcast %60 : vector<1x128xf32> to vector<8x128xf32>
    %62 = arith.mulf %33, %61 : vector<8x128xf32>
    %63 = arith.addf %59, %62 : vector<8x128xf32>
    %c2 = arith.constant 2 : index
    %c0_18 = arith.constant 0 : index
    %64 = vector.load %arg5[%c2, %c0_18] : memref<3x128xf32, #tpu.memory_space<vmem>>, vector<1x128xf32>
    %65 = vector.broadcast %64 : vector<1x128xf32> to vector<8x128xf32>
    %66 = arith.mulf %56, %65 : vector<8x128xf32>
    %67 = arith.addf %63, %66 : vector<8x128xf32>
    %68 = arith.negf %67 : vector<8x128xf32>
    %69 = math.exp %68 : vector<8x128xf32>
    %cst_19 = arith.constant 1.000000e+00 : f32
    %70 = vector.broadcast %cst_19 : f32 to vector<8x128xf32>
    %71 = arith.addf %70, %69 : vector<8x128xf32>
    %72 = arith.divf %70, %71 : vector<8x128xf32>
    %73 = arith.mulf %67, %72 : vector<8x128xf32>
    %74 = arith.truncf %73 : vector<8x128xf32> to vector<8x128xbf16>
    %c0_20 = arith.constant 0 : index
    %c0_21 = arith.constant 0 : index
    %75 = vector.load %arg6[%c0_20, %c0_21] : memref<128x128xbf16, #tpu.memory_space<vmem>>, vector<128x128xbf16>
    %cst_22 = arith.constant dense<0.000000e+00> : vector<8x128xf32>
    %76 = tpu.matmul %74, %75, %cst_22 {dimension_numbers = #tpu.dot_dimension_numbers<[1], [0], [0], [1], [0, 0, 1, 1], [], []>} : vector<8x128xbf16>, vector<128x128xbf16>, vector<8x128xf32> -> vector<8x128xf32>
    %c0_23 = arith.constant 0 : index
    %c0_24 = arith.constant 0 : index
    %77 = vector.load %arg7[%c0_23, %c0_24] : memref<1x128xf32, #tpu.memory_space<vmem>>, vector<1x128xf32>
    %78 = vector.broadcast %77 : vector<1x128xf32> to vector<8x128xf32>
    %79 = arith.addf %76, %78 : vector<8x128xf32>
    %80 = math.exp %79 : vector<8x128xf32>
    %cst_25 = arith.constant 2.000000e+00 : f32
    %81 = vector.broadcast %cst_25 : f32 to vector<8x128xf32>
    %82 = arith.addf %81, %80 : vector<8x128xf32>
    %83 = tpu.reciprocal %82 {approx = true} : vector<8x128xf32> -> vector<8x128xf32>
    %cst_26 = arith.constant 1.000000e+00 : f32
    %84 = vector.broadcast %cst_26 : f32 to vector<8x128xf32>
    %85 = arith.subf %84, %83 : vector<8x128xf32>
    %86 = arith.mulf %73, %85 : vector<8x128xf32>
    %87 = arith.mulf %86, %39 : vector<8x128xf32>
    %88 = arith.truncf %87 : vector<8x128xf32> to vector<8x128xbf16>
    %c0_27 = arith.constant 0 : index
    %c0_28 = arith.constant 0 : index
    %89 = vector.load %arg8[%c0_27, %c0_28] : memref<128x128xbf16, #tpu.memory_space<vmem>>, vector<128x128xbf16>
    %cst_29 = arith.constant dense<0.000000e+00> : vector<8x128xf32>
    %90 = tpu.matmul %88, %89, %cst_29 {dimension_numbers = #tpu.dot_dimension_numbers<[1], [0], [0], [1], [0, 0, 1, 1], [], []>} : vector<8x128xbf16>, vector<128x128xbf16>, vector<8x128xf32> -> vector<8x128xf32>
    %c0_30 = arith.constant 0 : index
    %c0_31 = arith.constant 0 : index
    %91 = vector.load %arg9[%c0_30, %c0_31] : memref<1x128xf32, #tpu.memory_space<vmem>>, vector<1x128xf32>
    %92 = vector.broadcast %91 : vector<1x128xf32> to vector<8x128xf32>
    %93 = arith.mulf %90, %92 : vector<8x128xf32>
    %94 = arith.addf %93, %0 : vector<8x128xf32>
    %c0_32 = arith.constant 0 : index
    %c0_33 = arith.constant 0 : index
    %95 = vector.load %arg10[%c0_32, %c0_33] : memref<8x128xf32, #tpu.memory_space<vmem>>, vector<8x128xf32>
    tpu.vector_store %arg10[%c0_32, %c0_33], %94 {strides = array<i32>} : memref<8x128xf32, #tpu.memory_space<vmem>>, vector<8x128xf32>,
    return
  }
  func.func @transform_0(%arg0: i32) -> (i32, i32) {
    %c0_i32 = arith.constant 0 : i32
    %c0_i32_0 = arith.constant 0 : i32
    return %arg0, %c0_i32 : i32, i32
  }
  func.func @transform_1(%arg0: i32) -> (i32, i32) {
    %c0_i32 = arith.constant 0 : i32
    %c0_i32_0 = arith.constant 0 : i32
    %c0_i32_1 = arith.constant 0 : i32
    return %c0_i32, %c0_i32_0 : i32, i32
  }
  func.func @transform_2(%arg0: i32) -> (i32, i32) {
    %c0_i32 = arith.constant 0 : i32
    %c0_i32_0 = arith.constant 0 : i32
    %c0_i32_1 = arith.constant 0 : i32
    return %c0_i32, %c0_i32_0 : i32, i32
  }
  func.func @transform_3(%arg0: i32) -> (i32, i32) {
    %c0_i32 = arith.constant 0 : i32
    %c0_i32_0 = arith.constant 0 : i32
    %c0_i32_1 = arith.constant 0 : i32
    return %c0_i32, %c0_i32_0 : i32, i32
  }
  func.func @transform_4(%arg0: i32) -> (i32, i32) {
    %c0_i32 = arith.constant 0 : i32
    %c0_i32_0 = arith.constant 0 : i32
    %c0_i32_1 = arith.constant 0 : i32
    return %c0_i32, %c0_i32_0 : i32, i32
  }
  func.func @transform_5(%arg0: i32) -> (i32, i32) {
    %c0_i32 = arith.constant 0 : i32
    %c0_i32_0 = arith.constant 0 : i32
    %c0_i32_1 = arith.constant 0 : i32
    return %c0_i32, %c0_i32_0 : i32, i32
  }
  func.func @transform_6(%arg0: i32) -> (i32, i32) {
    %c0_i32 = arith.constant 0 : i32
    %c0_i32_0 = arith.constant 0 : i32
    %c0_i32_1 = arith.constant 0 : i32
    return %c0_i32, %c0_i32_0 : i32, i32
  }
  func.func @transform_7(%arg0: i32) -> (i32, i32) {
    %c0_i32 = arith.constant 0 : i32
    %c0_i32_0 = arith.constant 0 : i32
    %c0_i32_1 = arith.constant 0 : i32
    return %c0_i32, %c0_i32_0 : i32, i32
  }
  func.func @transform_8(%arg0: i32) -> (i32, i32) {
    %c0_i32 = arith.constant 0 : i32
    %c0_i32_0 = arith.constant 0 : i32
    %c0_i32_1 = arith.constant 0 : i32
    return %c0_i32, %c0_i32_0 : i32, i32
  }
  func.func @transform_9(%arg0: i32) -> (i32, i32) {
    %c0_i32 = arith.constant 0 : i32
    %c0_i32_0 = arith.constant 0 : i32
    return %arg0, %c0_i32 : i32, i32
  }
}

</mosaic_0001>

<bundles_post_ra>
// kernel: unified_mamba_block.1
= control target key start
LH: loop header
LB: loop body
LE: loop exit
PB: predicated region body
PF: predicated region fallthrough
CT: control target
= control target key end

     0   :  { %s1537_s0 = inlined_call_operand.vmem [shape: f32[16,128], index: 0, kind: input, shape index: {}]   ;;  %s1538_s1 = inlined_call_operand.vmem [shape: f32[1,128], index: 1, kind: input, shape index: {}]   ;;  %s1539_s2 = inlined_call_operand.vmem [shape: f32[1,128], index: 2, kind: input, shape index: {}]   ;;  %s1540_s3 = inlined_call_operand.hbm [shape: bf16[128,256], index: 3, kind: input, shape index: {}]   ;;  %s1541_s4 = inlined_call_operand.vmem [shape: f32[3,128], index: 4, kind: input, shape index: {}]   ;;  %s1542_s5 = inlined_call_operand.hbm [shape: bf16[128,128], index: 5, kind: input, shape index: {}]   ;;  %s1543_s6 = inlined_call_operand.vmem [shape: f32[1,128], index: 6, kind: input, shape index: {}]   ;;  %s1544_s7 = inlined_call_operand.hbm [shape: bf16[128,128], index: 7, kind: input, shape index: {}]   ;;  %s1545_s8 = inlined_call_operand.vmem [shape: f32[1,128], index: 8, kind: input, shape index: {}]   ;;  %s1546_s9 = inlined_call_operand.hbm [shape: f32[16,128], index: 9, kind: output, shape index: {}]  }
   0x1   :  { %1548 = sst [smem:[#allocation14_spill]] %s1540_s3 }
   0x2   :  { %1549 = sst [smem:[#allocation15_spill]] %s1542_s5 }
   0x3   :  { %14 = vsyncpa [#allocation3], 0 }
   0x4   :  { %15 = vsyncpa [#allocation6], 0 }
   0x5   :  { %16 = vsyncpa [#allocation4], 0 }
   0x6   :  { %18 = vsyncpa [#allocation4 + $0x1], 0  ;;  %s1378_s30 = smov 0   ;;  %s1380_s10 = smov 0  }
   0x7   :  { %s1382_s11 = smov 0   ;;  %s1384_s12 = smov 0  }
   0x8 LB: > { %1550 = sst [smem:[#allocation12_spill]] %s1314_s11  ;;  %s1399_s13 = sadd.s32 4294967295, %s1318_s12   ;;  %s1318_s12 = sphi %s1384_s12, %s1562_s12   ;;  %s1314_s11 = sphi %s1382_s11, %s1559_s11   ;;  %s1310_s10 = sphi %s1380_s10, %s1561_s10   ;;  %s1306_s30 = sphi %s1378_s30, %s1560_s30  }
   0x9   : > { %s881_s14 = sadd.s32 4294967294, %s1318_s12   ;;  %s1403_s15 = sadd.s32 1, %s1318_s12  }
   0xa   : > { %s225_s16 = sadd.s32 1, %s1314_s11  ;;  %s222_s17 = ssub.s32 %s1318_s12, %s1403_s15 }
   0xb   : > { %p235_p0 = scmp.ne.s32.totalorder %s1314_s11, %s1310_s10  ;;  %p223_p1 = scmp.eq.s32.totalorder %s222_s17, 0 }
   0xc   : > { %p236_p2 = scmp.eq.s32.totalorder %s1399_s13, 1  ;;  %p241_p3 = scmp.ne.s32.totalorder %s1310_s10, %s1306_s30 }
   0xd   : > { %p242_p4 = scmp.eq.s32.totalorder %s881_s14, 1  ;;  %p882_p7 = scmp.ge.s32.totalorder %s1318_s12, 1 }
   0xe   : > { %s1414_s18 = scalar_select %p223_p1, %s1314_s11, %s225_s16  }
   0xf   : > { %p1416_p5 = por %p236_p2, %p235_p0  ;;  %p1420_p6 = por %p242_p4, %p241_p3 }
  0x10   : > { %1551 = sst [smem:[#allocation13_spill]] %s1414_s18  ;;  %p249_p8 = scmp.lt.s32.totalorder %s1318_s12, 3 }
  0x11   : > { %p1090_p9 = scmp.eq.s32.totalorder %s1399_s13, 0  ;;  %s1555_s5 = sld [smem:[#allocation15_spill]] }
  0x12   : > { %p1427_p10 = pnand %p882_p7, %p249_p8  ;;  %s1320_s25 = smov [#allocation5]  }
  0x13   : > { %s285_s26 = sshll.u32 %s1320_s25, 4  ;;  %s1557_s3 = sld [smem:[#allocation14_spill]]  ;;  %s286_s26 = int_to_ptr.vmem [resolvable:$true] %s285_s26 }
  0x14   : > { %p1076_p11 = pneg %p1427_p10  ;;  %s1321_s16 = smov 64  }
  0x15   : > { %s1322_s17 = smov 4   ;;  %s1323_s22 = smov [#allocation2]  }
  0x16   : > { %p1438_p12 = pnand %p1090_p9, %p1076_p11  ;;  %s268_s23 = sshll.u32 %s1323_s22, 4  ;;  %s269_s23 = int_to_ptr.vmem [resolvable:$true] %s268_s23 }
  0x17   : > { %s283_s24 = sshll.u32 %s1555_s5, 4  ;;  %s1324_s25 = smov 128   ;;  %s284_s24 = int_to_ptr.hbm [resolvable:$true] %s283_s24 }
  0x18   : > { %1082 = dma.hbm_to_vmem [thread:$0]  (!%p1438_p12), %s284_s24, 1024, %s286_s26, [#allocation6], %s1321_s16, %s1321_s16, %s1322_s17  }
  0x19   : > { %s266_s14 = sshll.u32 %s1557_s3, 4  ;;  %s1325_s5 = smov 8   ;;  %s267_s14 = int_to_ptr.hbm [resolvable:$true] %s266_s14 }
  0x1a   : > { %1079 = dma.hbm_to_vmem [thread:$0]  (!%p1438_p12), %s267_s14, 2048, %s269_s23, [#allocation3], %s1324_s25, %s1324_s25, %s1325_s5  }
  0x1b   : > { %s300_s28 = sshll.u32 %s1544_s7, 4  ;;  %s1326_s29 = smov [#allocation7]   ;;  %s301_s28 = int_to_ptr.hbm [resolvable:$true] %s300_s28 }
  0x1c   : > { %s302_s3 = sshll.u32 %s1326_s29, 4  ;;  %328 = sbr.rel (%p1427_p10) target bundleno = 781 (0x30d), region = 56  ;;  %s303_s3 = int_to_ptr.vmem [resolvable:$true] %s302_s3 }
  0x1d   : > { %1085 = dma.hbm_to_vmem [thread:$0]  (!%p1438_p12), %s301_s28, 1024, %s303_s3, [#allocation6], %s1321_s16, %s1321_s16, %s1322_s17  }
  0x21   : > { %1293 = dma.done.wait (%p1090_p9), [#allocation3], 2048  }
  0x22   : > { %1295 = vsyncadd (%p1090_p9), [#allocation3], 4294965248 }
  0x23   : > { %1297 = dma.done.wait (%p1090_p9), [#allocation6], 2048  }
  0x24   : > { %1299 = vsyncadd (%p1090_p9), [#allocation6], 4294965248  ;;  %p374_p13 = scmp.lt.s32.totalorder %s1399_s13, 1  ;;  %v952_v1 = vld [vmem:[#allocation2 + $0x70] sm:$0xf]  ;;  %v383_v7 = vlaneseq  ;;  %v1327_v11 = vmov 0.0  }
  0x25   : > { %v1045_v2 = vld [vmem:[#allocation2 + $0x74] sm:$0xf0]  ;;  %v1044_v3 = vld [vmem:[#allocation2 + $0x74] sm:$0xf]  ;;  %v954_v5 = vld [vmem:[#allocation2 + $0x78] sm:$0xf0] }
  0x26   : > { %s375_s5 = scalar_select %p374_p13, %s1399_s13, 1  ;;  %v953_v4 = vor.u32 %v1045_v2, %v952_v1  ;;  %v957_v6 = vor.u32 %v1044_v3, %v954_v5  ;;  %v384_v8 = vand.u32 127, %v383_v7  ;;  %v944_v16 = vld [vmem:[#allocation2 + $0x60] sm:$0xf]  ;;  %v1043_v17 = vld [vmem:[#allocation2 + $0x64] sm:$0xf0] }
  0x27   : > { %v1042_v18 = vld [vmem:[#allocation2 + $0x64] sm:$0xf]  ;;  %v945_v19 = vor.u32 %v1043_v17, %v944_v16  ;;  %v946_v20 = vld [vmem:[#allocation2 + $0x68] sm:$0xf0]  ;;  %v936_v22 = vld [vmem:[#allocation2 + $0x50] sm:$0xf] }
  0x28   : > { %s892_s3 = sshll.u32 %s375_s5, 3  ;;  %512 = vmatpush.bf16.msra.mxu0 %v953_v4  ;;  %525 = vmatpush.bf16.msra.mxu1 %v957_v6  ;;  %vm385_vm0 = vcmp.lt.s32.totalorder %v384_v8, 32  ;;  %v949_v21 = vor.u32 %v1042_v18, %v946_v20  ;;  %v1041_v23 = vld [vmem:[#allocation2 + $0x54] sm:$0xf0]  ;;  %v1040_v24 = vld [vmem:[#allocation2 + $0x54] sm:$0xf] }
  0x29   : > { %s377_s21 = scalar_lea.vmem %s1537_s0, %s892_s3  ;;  %v893_v12 = vsel %vm385_vm0, 1.0, %v1327_v11  ;;  %v937_v25 = vor.u32 %v1041_v23, %v936_v22  ;;  %v938_v26 = vld [vmem:[#allocation2 + $0x58] sm:$0xf0]  ;;  %v928_v28 = vld [vmem:[#allocation2 + $0x40] sm:$0xf]  ;;  %v1051_v16 = vld [vmem:[#allocation5 + $0x28] sm:$0xff] }
  0x2a   : > { %v1469_v0 = vld [vmem:[%s377_s21] sm:$0xff]  ;;  %v941_v27 = vor.u32 %v1040_v24, %v938_v26  ;;  %v1039_v29 = vld [vmem:[#allocation2 + $0x44] sm:$0xf0]  ;;  %v930_v32 = vld [vmem:[#allocation2 + $0x48] sm:$0xf0]  ;;  %v558_v18 = vshrl.u32 %v383_v7, 7 }
  0x2b   : > { %379 = vadd.xlane.f32.xlu0 %v1469_v0  ;;  %v1038_v30 = vld [vmem:[#allocation2 + $0x44] sm:$0xf]  ;;  %v929_v31 = vor.u32 %v1039_v29, %v928_v28  ;;  %v920_v34 = vld [vmem:[#allocation2 + $0x30] sm:$0xf]  ;;  %v1037_v35 = vld [vmem:[#allocation2 + $0x34] sm:$0xf0] }
  0x2c   : > { %513 = vmatpush.bf16.msra.mxu0 %v945_v19  ;;  %526 = vmatpush.bf16.msra.mxu1 %v949_v21  ;;  %v933_v33 = vor.u32 %v1038_v30, %v930_v32  ;;  %v1036_v36 = vld [vmem:[#allocation2 + $0x34] sm:$0xf]  ;;  %v921_v37 = vor.u32 %v1037_v35, %v920_v34  ;;  %v922_v38 = vld [vmem:[#allocation2 + $0x38] sm:$0xf0]  ;;  %v912_v40 = vld [vmem:[#allocation2 + $0x20] sm:$0xf] }
  0x2d   : > { %v925_v39 = vor.u32 %v1036_v36, %v922_v38  ;;  %v1035_v41 = vld [vmem:[#allocation2 + $0x24] sm:$0xf0]  ;;  %v1034_v42 = vld [vmem:[#allocation2 + $0x24] sm:$0xf]  ;;  %v914_v44 = vld [vmem:[#allocation2 + $0x28] sm:$0xf0] }
  0x2e   : > { %v913_v43 = vor.u32 %v1035_v41, %v912_v40  ;;  %v917_v45 = vor.u32 %v1034_v42, %v914_v44  ;;  %v904_v46 = vld [vmem:[#allocation2 + $0x10] sm:$0xf]  ;;  %v1033_v47 = vld [vmem:[#allocation2 + $0x14] sm:$0xf0]  ;;  %v1032_v48 = vld [vmem:[#allocation2 + $0x14] sm:$0xf] }
  0x2f   : > { %v905_v49 = vor.u32 %v1033_v47, %v904_v46  ;;  %v906_v50 = vld [vmem:[#allocation2 + $0x18] sm:$0xf0]  ;;  %v896_v51 = vld [vmem:[#allocation2] sm:$0xf]  ;;  %v1031_v52 = vld [vmem:[#allocation2 + $0x4] sm:$0xf0] }
  0x30   : > { %514 = vmatpush.bf16.msra.mxu0 %v937_v25  ;;  %527 = vmatpush.bf16.msra.mxu1 %v941_v27  ;;  %v909_v53 = vor.u32 %v1032_v48, %v906_v50  ;;  %v1030_v54 = vld [vmem:[#allocation2 + $0x4] sm:$0xf]  ;;  %v898_v55 = vld [vmem:[#allocation2 + $0x8] sm:$0xf0]  ;;  %v897_v56 = vor.u32 %v1031_v52, %v896_v51  ;;  %v1137_v4 = vld [vmem:[%s1538_s1] ss:$0 sm:$0xff] }
  0x31   : > { %v901_v57 = vor.u32 %v1030_v54, %v898_v55  ;;  %v1138_v8 = vld [vmem:[%s1539_s2] ss:$0 sm:$0xff]  ;;  %v559_v19 = vand.u32 7, %v558_v18  ;;  %v1048_v20 = vld [vmem:[#allocation5 + $0x10] sm:$0xff]  ;;  %v1047_v25 = vld [vmem:[#allocation5 + $0x8] sm:$0xff]  ;;  %s371_s3 = sand.u32 1, %s1310_s10  }
  0x32   : > { %v1050_v17 = vld [vmem:[#allocation5 + $0x20] sm:$0xff]  ;;  %v1061_v40 = vld [vmem:[#allocation7 + $0x38] sm:$0xff]  ;;  %v1060_v55 = vld [vmem:[#allocation7 + $0x30] sm:$0xff]  ;;  %s891_s11 = sshll.u32 %s371_s3, 3  ;;  %s1027_s18 = sshll.u32 %s1399_s13, 3 }
  0x33   : > { %vm560_vm4 = vcmp.ne.s32.totalorder %v559_v19, 0  ;;  %vm563_vm5 = vcmp.ne.s32.totalorder %v559_v19, 7  ;;  %v1139_v7 = vld [vmem:[%s1541_s4] ss:$0 sm:$0xff]  ;;  %v1140_v28 = vld [vmem:[%s1541_s4 + $0x1] ss:$0 sm:$0xff]  ;;  %755 = vmatpush.bf16.msra.mxu3 %v1061_v40  ;;  %s786_s14 = scalar_lea.hbm %s1546_s9, %s1027_s18 }
  0x34   : > { %515 = vmatpush.bf16.msra.mxu0 %v929_v31  ;;  %528 = vmatpush.bf16.msra.mxu1 %v933_v33  ;;  %v959_v22 = vsel %vm560_vm4, 1.0, %v1327_v11  ;;  %v960_v23 = vsel %vm563_vm5, 1.0, %v1327_v11  ;;  %v1141_v31 = vld [vmem:[%s1541_s4 + $0x2] ss:$0 sm:$0xff]  ;;  %s373_s16 = scalar_lea.vmem [#allocation8], %s891_s11  ;;  %s790_s22 = sshll.u32 %s786_s14, 4  ;;  %s791_s22 = int_to_ptr.hbm [resolvable:$true] %s790_s22 }
  0x35   : > { %v1046_v11 = vld [vmem:[#allocation5] sm:$0xff]  ;;  %s788_s17 = sshll.u32 %s373_s16, 4  ;;  %s776_s13 = scalar_lea.sflag [#allocation4], %s371_s3  ;;  %s789_s17 = int_to_ptr.vmem [resolvable:$true] %s788_s17 }
  0x36   : > { %s1262_s23 = sshra.s32 %s791_s22, 4  ;;  %s1268_s5 = scalar_lea.hbm %s1546_s9, 16  ;;  %s1263_s23 = int_to_ptr.hbm [resolvable:$true] %s1262_s23 }
  0x37   : > { %756 = vmatpush.bf16.msra.mxu3 %v1060_v55  ;;  %s1264_s25 = scalar_lea.hbm %s1263_s23, 8  ;;  %p1269_p3 = scmp.lt.s32.totalorder %s1263_s23, %s1546_s9 }
  0x38   : > { %516 = vmatpush.bf16.msra.mxu0 %v921_v37  ;;  %529 = vmatpush.bf16.msra.mxu1 %v925_v39  ;;  %p1265_p0 = scmp.ne.s32.totalorder %s1263_s23, %s1264_s25  ;;  %p1270_p4 = scmp.lt.s32.totalorder %s1268_s5, %s1264_s25 }
  0x3a   : > { %p1266_p1 = pnand %p1265_p0, %p1416_p5  ;;  %p1271_p7 = por %p1270_p4, %p1269_p3 }
  0x3c   : > { %517 = vmatpush.bf16.msra.mxu0 %v913_v43  ;;  %530 = vmatpush.bf16.msra.mxu1 %v917_v45  ;;  %p1267_p2 = pneg %p1266_p1 }
  0x3e   : > { %p1272_p8 = pnand %p1271_p7, %p1267_p2 }
  0x40   : > { %518 = vmatpush.bf16.msra.mxu0 %v905_v49  ;;  %531 = vmatpush.bf16.msra.mxu1 %v909_v53 }
  0x44   : > { %519 = vmatpush.bf16.msra.mxu0 %v897_v56  ;;  %532 = vmatpush.bf16.msra.mxu1 %v901_v57  ;;  %v1059_v56 = vld [vmem:[#allocation7 + $0x28] sm:$0xff]  ;;  %v1058_v57 = vld [vmem:[#allocation7 + $0x20] sm:$0xff] }
  0x45   : > { %757 = vmatpush.bf16.msra.mxu3 %v1059_v56 }
  0x49   : > { %758 = vmatpush.bf16.msra.mxu3 %v1058_v57 }
  0x9e   : > { %v380_v9 = vpop.xlane.xlu0 %379 }
  0x9f   : > { %v381_v10 = vmul.f32 0.03125, %v380_v9 }
  0xa1   : > { %v382_v13 = vsub.f32 %v1469_v0, %v381_v10 }
  0xa3   : > { %v1475_v14 = vmul.f32 %v893_v12, %v382_v13  ;;  %v1053_v13 = vld [vmem:[#allocation5 + $0x38] sm:$0xff] }
  0xa4   : > { %670 = vmatpush.bf16.msra.mxu2 %v1053_v13 }
  0xa5   : > { %v389_v15 = vmul.f32 %v1475_v14, %v1475_v14 }
  0xa7   : > { %390 = vadd.xlane.f32.xlu0 %v389_v15  ;;  %v1052_v15 = vld [vmem:[#allocation5 + $0x30] sm:$0xff] }
  0xa8   : > { %671 = vmatpush.bf16.msra.mxu2 %v1052_v15 }
  0xac   : > { %672 = vmatpush.bf16.msra.mxu2 %v1051_v16 }
  0xb0   : > { %673 = vmatpush.bf16.msra.mxu2 %v1050_v17 }
 0x11a   : > { %v391_v58 = vpop.xlane.xlu0 %390 }
 0x11b   : > { %v392_v59 = vmul.f32 0.03125, %v391_v58 }
 0x11d   : > { %v393_v60 = vadd.f32 1e-05, %v392_v59  ;;  %v1057_v59 = vld [vmem:[#allocation7 + $0x18] sm:$0xff] }
 0x11e   : > { %759 = vmatpush.bf16.msra.mxu3 %v1057_v59 }
 0x11f   : > { %1144 = vrsqrt.f32 %v393_v60  ;;  %vm400_vm2 = vweird.f32 %v393_v60 }
 0x125   : > { %v1145_v61 = vpop.eup %1144 }
 0x126   : > { %v395_v62 = vmul.f32 %v1145_v61, %v393_v60  ;;  %vm401_vm1 = vweird.f32 %v1145_v61  ;;  %v1056_v60 = vld [vmem:[#allocation7 + $0x10] sm:$0xff] }
 0x127   : > { %vm402_vm3 = vmor %vm400_vm2, %vm401_vm1  ;;  %760 = vmatpush.bf16.msra.mxu3 %v1056_v60 }
 0x128   : > { %v396_v63 = vmul.f32 %v1145_v61, %v395_v62 }
 0x12a   : > { %v397_v1 = vmul.f32 0.5, %v396_v63  ;;  %v1054_v63 = vld [vmem:[#allocation7] sm:$0xff] }
 0x12c   : > { %v398_v2 = vsub.f32 1.5, %v397_v1 }
 0x12e   : > { %v399_v3 = vmul.f32 %v1145_v61, %v398_v2  ;;  %v1142_v2 = vld [vmem:[%s1543_s6] ss:$0 sm:$0xff] }
 0x130   : > { %v403_v5 = vsel %vm402_vm3, %v1145_v61, %v399_v3  ;;  %v1055_v61 = vld [vmem:[#allocation7 + $0x8] sm:$0xff] }
 0x131   : > { %v404_v6 = vmul.f32 %v403_v5, %v1475_v14  ;;  %v1049_v14 = vld [vmem:[#allocation5 + $0x18] sm:$0xff]  ;;  %761 = vmatpush.bf16.msra.mxu3 %v1055_v61 }
 0x132   : > { %674 = vmatpush.bf16.msra.mxu2 %v1049_v14 }
 0x133   : > { %v409_v9 = vmul.f32 %v1137_v4, %v404_v6 }
 0x135   : > { %v414_v10 = vadd.f32 %v1138_v8, %v409_v9  ;;  %762 = vmatpush.bf16.msra.mxu3 %v1054_v63 }
 0x136   : > { %675 = vmatpush.bf16.msra.mxu2 %v1048_v20 }
 0x137   : > { %v415_v12 = vpack.c.bf16 %v414_v10, %v414_v10 }
 0x139   : > { %520 = vmatmul.bf16.vlgmr.msra.gmra.mxu0 %v415_v12  ;;  %533 = vmatmul.bf16.vlgmr.msra.gmra.mxu1 %v415_v12 }
 0x13a   : > { %676 = vmatpush.bf16.msra.mxu2 %v1047_v25 }
 0x13e   : > { %677 = vmatpush.bf16.msra.mxu2 %v1046_v11 }
 0x1b6   : > { %v521_v21 = vpop.f32.mrf.mxu0  ;;  %v534_v24 = vpop.f32.mrf.mxu1 }
 0x1b7   : > { %v566_v26 = vrot.slane %v521_v21, 7  ;;  %v568_v27 = vrot.slane %v521_v21, 1  ;;  %v575_v33 = vmul.f32 %v1140_v28, %v521_v21  ;;  %v958_v58 = vmul.f32 -1.442695, %v534_v24 }
 0x1b9   : > { %v567_v29 = vmul.f32 %v959_v22, %v566_v26  ;;  %v569_v30 = vmul.f32 %v960_v23, %v568_v27  ;;  %v1143_v26 = vld [vmem:[%s1545_s8] ss:$0 sm:$0xff] }
 0x1bb   : > { %v572_v32 = vmul.f32 %v1139_v7, %v567_v29  ;;  %v579_v35 = vmul.f32 %v1141_v31, %v569_v30 }
 0x1bd   : > { %v576_v34 = vadd.f32 %v575_v33, %v572_v32 }
 0x1be   : > { %v523_v36 = vpop.f32.mrf.mxu0  ;;  %v536_v37 = vpop.f32.mrf.mxu1 }
 0x1bf   : > { %v580_v38 = vadd.f32 %v579_v35, %v576_v34 }
 0x1c1   : > { %v961_v39 = vmul.f32 -1.442695, %v580_v38 }
 0x1c3   : > { %1146 = vpow2.f32 %v961_v39 }
 0x1c9   : > { %v1147_v41 = vpop.eup %1146 }
 0x1ca   : > { %v584_v42 = vadd.f32 1.0, %v1147_v41 }
 0x1cc   : > { %1148 = vrcp.f32 %v584_v42  ;;  %v596_v46 = vand.u32 2147483648, %v584_v42  ;;  %v594_v48 = vand.u32 2147483647, %v584_v42  ;;  %vm590_vm7 = vweird.f32 %v584_v42 }
 0x1cd   : > { %1150 = vpow2.f32 %v958_v58 }
 0x1ce   : > { %v597_v50 = vor.u32 1.1754944e-38, %v596_v46  ;;  %vm595_vm9 = vcmp.eq.f32.partialorder %v594_v48, 8.507059e+37 }
 0x1d2   : > { %v1149_v43 = vpop.eup %1148 }
 0x1d3   : > { %v586_v44 = vmul.f32 %v1149_v43, %v584_v42  ;;  %vm591_vm6 = vweird.f32 %v1149_v43  ;;  %v1151_v62 = vpop.eup %1150 }
 0x1d4   : > { %vm592_vm8 = vmor %vm590_vm7, %vm591_vm6  ;;  %v541_v1 = vadd.f32 1.0, %v1151_v62 }
 0x1d5   : > { %v587_v45 = vsub.f32 1.0, %v586_v44 }
 0x1d6   : > { %1152 = vrcp.f32 %v541_v1  ;;  %v553_v17 = vand.u32 2147483648, %v541_v1  ;;  %vm547_vm11 = vweird.f32 %v541_v1  ;;  %v551_v18 = vand.u32 2147483647, %v541_v1 }
 0x1d7   : > { %v588_v47 = vmul.f32 %v1149_v43, %v587_v45 }
 0x1d8   : > { %v554_v21 = vor.u32 1.1754944e-38, %v553_v17  ;;  %vm552_vm13 = vcmp.eq.f32.partialorder %v551_v18, 8.507059e+37 }
 0x1d9   : > { %v589_v49 = vadd.f32 %v1149_v43, %v588_v47 }
 0x1db   : > { %v593_v51 = vsel %vm592_vm8, %v1149_v43, %v589_v49 }
 0x1dc   : > { %v598_v52 = vsel %vm595_vm9, %v597_v50, %v593_v51  ;;  %v1153_v5 = vpop.eup %1152 }
 0x1dd   : > { %v600_v53 = vmul.f32 %v598_v52, %v580_v38  ;;  %v543_v8 = vmul.f32 %v1153_v5, %v541_v1  ;;  %vm548_vm10 = vweird.f32 %v1153_v5 }
 0x1de   : > { %vm549_vm12 = vmor %vm547_vm11, %vm548_vm10 }
 0x1df   : > { %v601_v54 = vpack.c.bf16 %v600_v53, %v600_v53  ;;  %v544_v10 = vsub.f32 1.0, %v543_v8 }
 0x1e1   : > { %678 = vmatmul.bf16.vlgmr.msra.gmra.mxu2 %v601_v54  ;;  %v545_v15 = vmul.f32 %v1153_v5, %v544_v10 }
 0x1e3   : > { %v546_v16 = vadd.f32 %v1153_v5, %v545_v15 }
 0x1e5   : > { %v550_v20 = vsel %vm549_vm12, %v1153_v5, %v546_v16 }
 0x1e6   : > { %v555_v23 = vsel %vm552_vm13, %v554_v21, %v550_v20 }
 0x264   : > { %v679_v3 = vpop.f32.mrf.mxu2 }
 0x265   : > { %v680_v4 = vadd.f32 %v1142_v2, %v679_v3 }
 0x267   : > { %v683_v6 = vmul.f32 1.442695, %v680_v4 }
 0x269   : > { %1154 = vpow2.f32 %v683_v6 }
 0x26c   : > { %v681_v9 = vpop.f32.mrf.mxu2 }
 0x26f   : > { %v1155_v12 = vpop.eup %1154 }
 0x270   : > { %v685_v13 = vadd.f32 2.0, %v1155_v12 }
 0x272   : > { %1156 = vrcp.f32 %v685_v13 }
 0x278   : > { %v1157_v14 = vpop.eup %1156 }
 0x279   : > { %v687_v19 = vsub.f32 1.0, %v1157_v14 }
 0x27b   : > { %v688_v22 = vmul.f32 %v687_v19, %v600_v53 }
 0x27d   : > { %v689_v24 = vmul.f32 %v688_v22, %v555_v23 }
 0x27f   : > { %v690_v25 = vpack.c.bf16 %v689_v24, %v689_v24 }
 0x281   : > { %763 = vmatmul.bf16.vlgmr.msra.gmra.mxu3 %v690_v25 }
 0x304   : > { %v764_v27 = vpop.f32.mrf.mxu3 }
 0x305   : > { %v772_v7 = vmul.f32 %v1143_v26, %v764_v27 }
 0x307   : > { %v773_v28 = vadd.f32 %v772_v7, %v1469_v0 }
 0x309   : > { %774 = vst [vmem:[%s373_s16] sm:$0xff] %v773_v28 }
 0x30a   : > { %1275 = shalt.err (!%p1272_p8)
}
 0x30b   : > { %1074 = dma.vmem_to_hbm [thread:$0]  (%p1416_p5), %s789_s17, 128, %s791_s22, %s776_s13  }
 0x30c   : > { %v766_v0 = vpop.f32.mrf.mxu3 }
 0x30d PF: > { %p1096_p9 = scmp.ge.s32.totalorder %s1318_s12, 2  ;;  %s802_s3 = sand.u32 1, %s1306_s30  }
 0x30e   : > { %s803_s21 = scalar_lea.sflag [#allocation4], %s802_s3 }
 0x30f   : > { %p1087_p10 = pnand %p1096_p9, %p1420_p6 }
 0x311   : > { %p1088_p11 = pneg %p1087_p10 }
 0x313   : > { %1301 = dma.done.wait (%p1088_p11), %s803_s21, 128  }
 0x314   : > { %1303 = vsyncadd (%p1088_p11), %s803_s21, 4294967168  ;;  %s1558_s24 = sld [smem:[#allocation12_spill]]  ;;  %p21_p12 = scmp.ge.s32.totalorder %s1403_s15, 4  }
 0x315   : > { %s1559_s11 = sld [smem:[#allocation13_spill]]  ;;  %s1560_s30 = smov %s1310_s10 }
 0x316   : > { %s1562_s12 = smov %s1403_s15  ;;  %23 = sbr.rel (!%p21_p12) target bundleno = 8 (0x8), region = 104 }
 0x31a   : > { %s1561_s10 = smov %s1558_s24 }
 0x31b   :  { %809 = vsyncpa [#allocation3], 1 }
 0x31c   :  { %811 = vsyncpa [#allocation3 + $0x1], 1 }
 0x31d   :  { %812 = vsyncpa [#allocation6], 1 }
 0x31e   :  { %813 = vsyncpa [#allocation4], 1 }
 0x31f   :  { %815 = vsyncpa [#allocation4 + $0x1], 1 }

</bundles_post_ra>
